<compile_context>
chip_gen: v6e
topology: v6e:2x2x1
jax: 0.10.0
libtpu: 0.0.40
codegen_flags: <defaults>
</compile_context>

<pallas_src>
import jax
import jax.numpy as jnp
from jax.experimental import pallas as pl
from jax.experimental.pallas import tpu as pltpu

LANES = 128  # pad S to one full lane group per batch element


def _make_simple_kernel(B1, B2, s_pad):
    """Kernel closed over the small, static batch sizes / padded seq length."""
    n1 = B1 * s_pad

    def kernel(tT_ref, wT_ref, b2f_ref, o_ref):
        # ONE MXU matmul over all (B1+B2)*s_pad lanes, fully lane-dense:
        #   o^T = w_f^T @ t^T   -> (O, (B1+B2)*s_pad)
        o = jnp.dot(wT_ref[...], tT_ref[...],
                    preferred_element_type=jnp.float32)

        def batch_max(base, B):
            # Max over the batch axis = full-vreg VPU maxima between 128-lane
            # groups (every slice start is a multiple of 128; B is tiny, so
            # the Python loop is just a handful of jnp.maximum ops).
            acc = o[:, base:base + s_pad]
            for b in range(1, B):
                lo = base + b * s_pad
                acc = jnp.maximum(acc, o[:, lo:lo + s_pad])
            return acc

        # Folded bias (already doubled in the wrapper: one b_f per branch).
        # It is batch-constant, so it commutes with the max and is applied
        # once at the end.  Store is an unmasked, 128-lane-wide write.
        o_ref[...] = batch_max(0, B1) + batch_max(n1, B2) + b2f_ref[...]

    return kernel


def simple_forward(x, y, w1, b1, w2, b2):
    B1, S, D = x.shape
    B2, S2, D2 = y.shape
    assert S == S2 and D == D2
    H = w1.shape[1]
    O = w2.shape[1]
    s_pad = LANES

    # ---- hoisted weight fold (wrapper side; exact, no activation between the
    # two linear layers):  lin2(lin1(t)) = t @ (w1 @ w2) + (b1 @ w2 + b2) ----
    w_f = jnp.dot(w1, w2)                 # (D, O)
    b_f = jnp.dot(b1, w2) + b2            # (O,)
    w_fT = w_f.T                          # (O, D): kernel computes o^T
    b2f = (2.0 * b_f).reshape(O, 1)       # one b_f per branch; lane-broadcast

    def flat_t(t, B):
        # (B, S, D) -> (D, B*s_pad); batch b's zero-padded sequence occupies
        # lanes [b*128, (b+1)*128).  Pure layout plumbing in the wrapper.
        t = jnp.pad(t, ((0, 0), (0, s_pad - S), (0, 0)))
        return jnp.transpose(t, (2, 0, 1)).reshape(D, B * s_pad)

    tT = jnp.concatenate([flat_t(x, B1), flat_t(y, B2)], axis=1)  # (D, N_lanes)

    n_lanes = (B1 + B2) * s_pad
    cost = pl.CostEstimate(
        flops=2 * n_lanes * D * O,
        transcendentals=0,
        bytes_accessed=4 * (D * n_lanes + O * D + O + O * s_pad),
    )

    # Everything is tiny (~60 KB): keep all operands fully resident in VMEM,
    # no grid, no extra pipelining (right call on v5e/v6e/v7x at this size).
    vmem = pl.BlockSpec(memory_space=pltpu.MemorySpace.VMEM)
    oT = pl.pallas_call(
        _make_simple_kernel(B1, B2, s_pad),
        out_shape=jax.ShapeDtypeStruct((O, s_pad), jnp.float32),
        in_specs=[vmem, vmem, vmem],
        out_specs=vmem,
        cost_estimate=cost,
    )(tT, w_fT, b2f)

    # Final (S, O) view: a single tiny transpose+slice at the call boundary.
    return oT[:, :S].T


def simple_reference(x, y, w1, b1, w2, b2):
    def branch(t):
        h = jnp.einsum("bsd,dh->bsh", t, w1) + b1
        o = jnp.einsum("bsh,ho->bso", h, w2) + b2
        return jnp.max(o, axis=0)
    return branch(x) + branch(y)


if __name__ == "__main__":
    # Module hyperparameters implied by the script: input_dim=10 (last dim of
    # x / y); small hid/out dims.
    input_dim, hid_dim, out_dim = 10, 32, 16
    B1, B2, S = 4, 5, 50

    key = jax.random.PRNGKey(0)
    kx, ky, kw1, kb1, kw2, kb2 = jax.random.split(key, 6)

    x = jax.random.normal(kx, (B1, S, input_dim), dtype=jnp.float32)
    y = jax.random.normal(ky, (B2, S, input_dim), dtype=jnp.float32)

    # Deterministic parameter init (stored (in, out) == PyTorch weight.T).
    w1 = jax.random.normal(kw1, (input_dim, hid_dim), dtype=jnp.float32) * 0.1
    b1 = jax.random.normal(kb1, (hid_dim,), dtype=jnp.float32) * 0.1
    w2 = jax.random.normal(kw2, (hid_dim, out_dim), dtype=jnp.float32) * 0.1
    b2 = jax.random.normal(kb2, (out_dim,), dtype=jnp.float32) * 0.1

    fwd = jax.jit(simple_forward)
    out = fwd(x, y, w1, b1, w2, b2)
    jax.block_until_ready(out)

    ref = simple_reference(x, y, w1, b1, w2, b2)
    assert out.shape == (S, out_dim)
    assert jnp.allclose(out, ref, atol=1e-4, rtol=1e-4), \
        float(jnp.max(jnp.abs(out - ref)))

    print("KERNEL_OK")
</pallas_src>

<mosaic_0001>
module attributes {stable_mosaic.version = 11 : i64} {
  func.func @kernel(%arg0: memref<10x1152xf32, #tpu.memory_space<vmem>>, %arg1: memref<16x10xf32, #tpu.memory_space<vmem>>, %arg2: memref<16x1xf32, #tpu.memory_space<vmem>>, %arg3: memref<16x128xf32, #tpu.memory_space<vmem>>) attributes {dimension_semantics = [], scalar_prefetch = 0 : i64, scratch_operands = 0 : i64, tpu.core_type = #tpu.core_type<tc>} {
    %c0 = arith.constant 0 : index
    %c0_0 = arith.constant 0 : index
    %0 = vector.load %arg1[%c0, %c0_0] : memref<16x10xf32, #tpu.memory_space<vmem>>, vector<16x10xf32>
    %c0_1 = arith.constant 0 : index
    %c0_2 = arith.constant 0 : index
    %1 = vector.load %arg0[%c0_1, %c0_2] : memref<10x1152xf32, #tpu.memory_space<vmem>>, vector<10x1152xf32>
    %cst = arith.constant dense<0.000000e+00> : vector<16x1152xf32>
    %2 = tpu.matmul %0, %1, %cst {dimension_numbers = #tpu.dot_dimension_numbers<[1], [0], [0], [1], [0, 0, 1, 1], [], []>} : vector<16x10xf32>, vector<10x1152xf32>, vector<16x1152xf32> -> vector<16x1152xf32>
    %3 = vector.extract_strided_slice %2 {offsets = [0, 0], sizes = [16, 128], strides = [1, 1]} : vector<16x1152xf32> to vector<16x128xf32>
    %4 = vector.extract_strided_slice %2 {offsets = [0, 128], sizes = [16, 128], strides = [1, 1]} : vector<16x1152xf32> to vector<16x128xf32>
    %5 = arith.maximumf %3, %4 : vector<16x128xf32>
    %6 = vector.extract_strided_slice %2 {offsets = [0, 256], sizes = [16, 128], strides = [1, 1]} : vector<16x1152xf32> to vector<16x128xf32>
    %7 = arith.maximumf %5, %6 : vector<16x128xf32>
    %8 = vector.extract_strided_slice %2 {offsets = [0, 384], sizes = [16, 128], strides = [1, 1]} : vector<16x1152xf32> to vector<16x128xf32>
    %9 = arith.maximumf %7, %8 : vector<16x128xf32>
    %10 = vector.extract_strided_slice %2 {offsets = [0, 512], sizes = [16, 128], strides = [1, 1]} : vector<16x1152xf32> to vector<16x128xf32>
    %11 = vector.extract_strided_slice %2 {offsets = [0, 640], sizes = [16, 128], strides = [1, 1]} : vector<16x1152xf32> to vector<16x128xf32>
    %12 = arith.maximumf %10, %11 : vector<16x128xf32>
    %13 = vector.extract_strided_slice %2 {offsets = [0, 768], sizes = [16, 128], strides = [1, 1]} : vector<16x1152xf32> to vector<16x128xf32>
    %14 = arith.maximumf %12, %13 : vector<16x128xf32>
    %15 = vector.extract_strided_slice %2 {offsets = [0, 896], sizes = [16, 128], strides = [1, 1]} : vector<16x1152xf32> to vector<16x128xf32>
    %16 = arith.maximumf %14, %15 : vector<16x128xf32>
    %17 = vector.extract_strided_slice %2 {offsets = [0, 1024], sizes = [16, 128], strides = [1, 1]} : vector<16x1152xf32> to vector<16x128xf32>
    %18 = arith.maximumf %16, %17 : vector<16x128xf32>
    %19 = arith.addf %9, %18 : vector<16x128xf32>
    %c0_3 = arith.constant 0 : index
    %c0_4 = arith.constant 0 : index
    %20 = vector.load %arg2[%c0_3, %c0_4] : memref<16x1xf32, #tpu.memory_space<vmem>>, vector<16x1xf32>
    %21 = vector.broadcast %20 : vector<16x1xf32> to vector<16x128xf32>
    %22 = arith.addf %19, %21 : vector<16x128xf32>
    %c0_5 = arith.constant 0 : index
    %c0_6 = arith.constant 0 : index
    %23 = vector.load %arg3[%c0_5, %c0_6] : memref<16x128xf32, #tpu.memory_space<vmem>>, vector<16x128xf32>
    tpu.vector_store %arg3[%c0_5, %c0_6], %22 {strides = array<i32>} : memref<16x128xf32, #tpu.memory_space<vmem>>, vector<16x128xf32>,
    return
  }
}

</mosaic_0001>

<bundles_post_ra>
// kernel: simple_forward.1
= control target key start
LH: loop header
LB: loop body
LE: loop exit
PB: predicated region body
PF: predicated region fallthrough
CT: control target
= control target key end

     0   :  { %vm41_vm0 = vcmask 1041408   ;;  %v521_v3 = vmov 0.0   ;;  %v522_v7 = vmov 0   ;;  %vm34_vm1 = vcmask 80896   ;;  %s635_s0 = inlined_call_operand.vmem [shape: f32[10,1152], index: 0, kind: input, shape index: {}]   ;;  %s636_s1 = inlined_call_operand.vmem [shape: f32[16,10], index: 1, kind: input, shape index: {}]   ;;  %s637_s2 = inlined_call_operand.vmem [shape: f32[16,1], index: 2, kind: input, shape index: {}]   ;;  %s638_s3 = inlined_call_operand.vmem [shape: f32[16,128], index: 3, kind: output, shape index: {}]  }
   0x1   :  { %v26_v0 = vld [vmem:[%s635_s0 + $0x50] sm:$0x3]  ;;  %v25_v1 = vld [vmem:[%s635_s0 + $0x48] sm:$0x3]  ;;  %133 = vmatprep.mubr.f32.mxu0 %v521_v3  ;;  %210 = vmatprep.mubr.f32.mxu1 %v521_v3  ;;  %v16_v4 = vld [vmem:[%s635_s0] sm:$0xff] }
   0x2   :  { %v17_v2 = vld [vmem:[%s635_s0 + $0x8] sm:$0xff]  ;;  %488 = vmatprep.subr.msk.mxu0 %vm41_vm0, %v26_v0  ;;  %v28_v5 = vld [vmem:[%s635_s0 + $0x60] sm:$0x3]  ;;  %520 = vset.pattern.permute.xlu0 %v522_v7  ;;  %v27_v8 = vld [vmem:[%s635_s0 + $0x58] sm:$0x3] }
   0x3   :  { %v14_v6 = vld [vmem:[%s636_s1] sm:$0xff]  ;;  %489 = vmatpush1.msk.msra.mxu0 %vm41_vm0, %v25_v1  ;;  %492 = vmatprep.subr.msk.mxu1 %vm41_vm0, %v28_v5  ;;  %v30_v9 = vld [vmem:[%s635_s0 + $0x70] sm:$0x3]  ;;  %v19_v10 = vld [vmem:[%s635_s0 + $0x18] sm:$0xff] }
   0x4   :  { %99 = vmatprep.subr.mxu0 %v17_v2  ;;  %493 = vmatpush1.msk.msra.mxu1 %vm41_vm0, %v27_v8  ;;  %v29_v11 = vld [vmem:[%s635_s0 + $0x68] sm:$0x3]  ;;  %v18_v12 = vld [vmem:[%s635_s0 + $0x10] sm:$0xff]  ;;  %v32_v14 = vld [vmem:[%s635_s0 + $0x80] sm:$0x3] }
   0x5   :  { %100 = vmatpush1.msra.mxu0 %v16_v4  ;;  %176 = vmatprep.subr.mxu1 %v19_v10  ;;  %v21_v13 = vld [vmem:[%s635_s0 + $0x28] sm:$0xff]  ;;  %v31_v16 = vld [vmem:[%s635_s0 + $0x78] sm:$0x3]  ;;  %v20_v17 = vld [vmem:[%s635_s0 + $0x20] sm:$0xff] }
   0x6   :  { %490 = vmatmul.mubr.msk.f32.vlgmr.msra.gmra.mxu0 %vm34_vm1, %v14_v6  ;;  %496 = vmatprep.subr.msk.mxu0 %vm41_vm0, %v30_v9  ;;  %v15_v15 = vld [vmem:[%s636_s1 + $0x8] sm:$0xff]  ;;  %v23_v18 = vld [vmem:[%s635_s0 + $0x38] sm:$0xff]  ;;  %v22_v19 = vld [vmem:[%s635_s0 + $0x30] sm:$0xff] }
   0x7   :  { %497 = vmatpush1.msk.msra.mxu0 %vm41_vm0, %v29_v11  ;;  %177 = vmatpush1.msra.mxu1 %v18_v12  ;;  %v33_v20 = vld [vmem:[%s635_s0 + $0x88] sm:$0x3]  ;;  %v24_v21 = vld [vmem:[%s635_s0 + $0x40] sm:$0xff] }
   0x8   :  { %139 = vmatprep.mubr.f32.mxu0 %v521_v3  ;;  %494 = vmatmul.mubr.msk.f32.vlgmr.msra.gmra.mxu1 %vm34_vm1, %v14_v6  ;;  %v468_v22 = vld [vmem:[%s637_s2] sm:$0xff]  ;;  %v469_v23 = vld [vmem:[%s637_s2 + $0x8] sm:$0xff] }
   0x9   :  { %253 = vmatprep.subr.mxu0 %v21_v13  ;;  %500 = vmatprep.subr.msk.mxu1 %vm41_vm0, %v32_v14 }
   0xa   :  { %491 = vmatmul.mubr.msk.f32.gmra.mxu0 %vm34_vm1, %v15_v15  ;;  %501 = vmatpush1.msk.msra.mxu1 %vm41_vm0, %v31_v16 }
   0xb   :  { %254 = vmatpush1.msra.mxu0 %v20_v17  ;;  %216 = vmatprep.mubr.f32.mxu1 %v521_v3 }
   0xc   :  { %495 = vmatmul.mubr.msk.f32.gmra.mxu1 %vm34_vm1, %v15_v15  ;;  %287 = vmatprep.mubr.f32.mxu0 %v521_v3 }
   0xd   :  { %330 = vmatprep.subr.mxu1 %v23_v18  ;;  %364 = vmatprep.mubr.f32.mxu1 %v521_v3 }
   0xe   :  { %498 = vmatmul.mubr.msk.f32.vlgmr.msra.gmra.mxu0 %vm34_vm1, %v14_v6  ;;  %331 = vmatpush1.msra.mxu1 %v22_v19 }
   0xf   :  { %511 = vmatprep.subr.msk.mxu0 %vm41_vm0, %v33_v20  ;;  %293 = vmatprep.mubr.f32.mxu0 %v521_v3 }
  0x10   :  { %502 = vmatmul.mubr.msk.f32.vlgmr.msra.gmra.mxu1 %vm34_vm1, %v14_v6  ;;  %512 = vmatpush3.msk.msra.mxu0 %vm41_vm0, %v33_v20 }
  0x11   :  { %370 = vmatprep.mubr.f32.mxu1 %v521_v3  ;;  %513 = vmatprep.subr.mxu0 %v24_v21 }
  0x12   :  { %499 = vmatmul.mubr.msk.f32.gmra.mxu0 %vm34_vm1, %v15_v15  ;;  %472 = vperm.xlu0 %520, %v468_v22  }
  0x13   :  { %514 = vmatpush3.msra.mxu0 %v24_v21  ;;  %515 = vmatprep.mubr.msk.f32.mxu0 %vm34_vm1, %v14_v6 }
  0x14   :  { %503 = vmatmul.mubr.msk.f32.gmra.mxu1 %vm34_vm1, %v15_v15 }
  0x16   :  { %516 = vmatmul.mubr.msk.f32.vlgmr.msra.gmra.mxu0 %vm34_vm1, %v15_v15  ;;  %477 = vperm.xlu0 %520, %v469_v23  }
  0x8d   :  { %v473_v49 = vpop.permute.xlu0 %472 }
  0x91   :  { %v478_v60 = vpop.permute.xlu0 %477 }
  0xc6   :  { %v135_v24 = vpop.f32.mrf.mxu0 }
  0xc8   :  { %v137_v25 = vpop.f32.mrf.mxu0  ;;  %v212_v26 = vpop.f32.mrf.mxu1 }
  0xc9   :  { %v452_v35 = vmax.f32 %v135_v24, %v137_v25 }
  0xca   :  { %v141_v27 = vpop.f32.mrf.mxu0  ;;  %v214_v28 = vpop.f32.mrf.mxu1 }
  0xcb   :  { %v454_v43 = vmax.f32 %v452_v35, %v212_v26 }
  0xcc   :  { %v143_v29 = vpop.f32.mrf.mxu0  ;;  %v218_v30 = vpop.f32.mrf.mxu1 }
  0xcd   :  { %v453_v39 = vmax.f32 %v141_v27, %v143_v29  ;;  %v456_v52 = vmax.f32 %v454_v43, %v214_v28 }
  0xce   :  { %v289_v31 = vpop.f32.mrf.mxu0  ;;  %v220_v32 = vpop.f32.mrf.mxu1 }
  0xcf   :  { %v455_v46 = vmax.f32 %v453_v39, %v218_v30 }
  0xd0   :  { %v291_v33 = vpop.f32.mrf.mxu0  ;;  %v366_v34 = vpop.f32.mrf.mxu1 }
  0xd1   :  { %v458_v36 = vmax.f32 %v289_v31, %v291_v33  ;;  %v457_v55 = vmax.f32 %v455_v46, %v220_v32 }
  0xd2   :  { %v295_v37 = vpop.f32.mrf.mxu0  ;;  %v368_v38 = vpop.f32.mrf.mxu1 }
  0xd3   :  { %v460_v40 = vmax.f32 %v458_v36, %v366_v34 }
  0xd4   :  { %v297_v41 = vpop.f32.mrf.mxu0  ;;  %v372_v42 = vpop.f32.mrf.mxu1 }
  0xd5   :  { %v459_v44 = vmax.f32 %v295_v37, %v297_v41  ;;  %v462_v47 = vmax.f32 %v460_v40, %v368_v38 }
  0xd6   :  { %v517_v45 = vpop.f32.mrf.mxu0  ;;  %v374_v50 = vpop.f32.mrf.mxu1 }
  0xd7   :  { %v461_v48 = vmax.f32 %v459_v44, %v372_v42 }
  0xd8   :  { %v443_v51 = vpop.f32.mrf.mxu0 }
  0xd9   :  { %v463_v53 = vmax.f32 %v461_v48, %v374_v50  ;;  %v464_v54 = vmax.f32 %v462_v47, %v443_v51 }
  0xdb   :  { %v465_v56 = vmax.f32 %v463_v53, %v517_v45  ;;  %v466_v57 = vadd.f32 %v464_v54, %v456_v52 }
  0xdd   :  { %v480_v58 = vadd.f32 %v473_v49, %v466_v57  ;;  %v467_v59 = vadd.f32 %v465_v56, %v457_v55 }
  0xdf   :  { %v481_v61 = vadd.f32 %v478_v60, %v467_v59  ;;  %482 = vst [vmem:[%s638_s3] sm:$0xff] %v480_v58 }
  0xe1   :  { %483 = vst [vmem:[%s638_s3 + $0x8] sm:$0xff] %v481_v61 }

</bundles_post_ra>
